<compile_context>
chip_gen: v5e
topology: v5e:2x2
jax: 0.10.0
libtpu: 0.0.40
codegen_flags: <defaults>
</compile_context>

<pallas_src>
import functools

import jax
import jax.numpy as jnp
from jax.experimental import pallas as pl
from jax.experimental.pallas import tpu as pltpu


def _rna_classifier_kernel(x_ref,       # VMEM (D, B)  = x^T
                           w1_ref,      # VMEM (H, D)  torch layout [out, in]
                           b1_ref,      # VMEM (H, 1)
                           gamma_ref,   # VMEM (H, 1)
                           beta_ref,    # VMEM (H, 1)
                           w2_ref,      # VMEM (H, 1)  pre-scaled by 1/(1-p)
                           b2_ref,      # VMEM (1, 1)
                           bits_ref,    # VMEM (H, B)  int32 random bits
                           out_ref,     # VMEM (1, B)
                           *, keep_threshold, apply_dropout):
    x_t = x_ref[...].astype(jnp.float32)                        # [D, B]

    # ---- fc1: h = W1 @ x^T + b1  (MXU: M=H, K=D, N=B lane-dense) ----------
    h = jnp.dot(w1_ref[...], x_t, preferred_element_type=jnp.float32)
    h = h + b1_ref[...]                                          # [H, B]

    # ---- BatchNorm1d (training: batch stats, biased variance, eps=1e-5) ---
    mean = jnp.mean(h, axis=1, keepdims=True)                    # [H, 1]
    centered = h - mean
    var = jnp.mean(centered * centered, axis=1, keepdims=True)   # [H, 1]
    scale = gamma_ref[...] * jax.lax.rsqrt(var + 1e-5)           # [H, 1]
    h = centered * scale + beta_ref[...]                         # 1 FMA / elem

    # ---- ReLU ---------------------------------------------------------------
    h = jnp.maximum(h, 0.0)

    # ---- Dropout (training; inverted 1/(1-p) scale already folded into w2) -
    if apply_dropout:
        keep = bits_ref[...] >= jnp.int32(keep_threshold)        # 1 cmp
        h = jnp.where(keep, h, 0.0)                              # 1 select

    # ---- fc2 as VPU multiply + sublane reduce (no N=1 MXU pass) + sigmoid --
    z = jnp.sum(h * w2_ref[...], axis=0, keepdims=True) + b2_ref[...]  # [1, B]
    out_ref[...] = jax.nn.sigmoid(z)


def rna_classifier_forward(x, params, key, dropout_p=0.5):
    """Fused forward pass (training-mode BN/dropout).

    x: [B, input_size] float32.  Returns [B, 1] float32, like the torch module.
    """
    assert 0.0 <= dropout_p < 1.0, "dropout_p must be in [0, 1)"
    B, _ = x.shape
    w1, b1, gamma, beta, w2, b2 = params          # torch-layout parameters
    H = w1.shape[0]

    # Layout plumbing (wrapper side): batch on lanes, lane-dense output.
    x_t = x.T                                     # [D, B]
    b1_c = b1.reshape(H, 1)
    gamma_c = gamma.reshape(H, 1)
    beta_c = beta.reshape(H, 1)
    # Fold inverted-dropout scale into the fc2 weights only (never the bias).
    w2_c = w2.T.astype(jnp.float32) * (1.0 / (1.0 - dropout_p))   # [H, 1]
    b2_c = b2.reshape(1, 1)

    # Uniform random bits reinterpreted as int32; keep iff bits >= threshold,
    # so P(keep) = 1 - p (exact to 2^-32).
    bits = jax.lax.bitcast_convert_type(
        jax.random.bits(key, (H, B), jnp.uint32), jnp.int32)
    threshold = min(int(round(dropout_p * (2 ** 32))), 2 ** 32 - 1) - 2 ** 31

    kernel = functools.partial(
        _rna_classifier_kernel,
        keep_threshold=threshold,
        apply_dropout=dropout_p > 0.0,
    )

    vmem = pl.BlockSpec(memory_space=pltpu.MemorySpace.VMEM)
    out_t = pl.pallas_call(
        kernel,
        out_shape=jax.ShapeDtypeStruct((1, B), jnp.float32),
        in_specs=[vmem] * 8,
        out_specs=vmem,
    )(x_t, w1, b1_c, gamma_c, beta_c, w2_c, b2_c, bits)

    return out_t.T                                # [B, 1]


def init_params(key, input_size, hidden_size):
    """PyTorch-default init (uniform +-1/sqrt(fan_in)); torch parameter layouts."""
    k1, k2, k3, k4 = jax.random.split(key, 4)
    lim1 = 1.0 / (input_size ** 0.5)
    lim2 = 1.0 / (hidden_size ** 0.5)
    w1 = jax.random.uniform(k1, (hidden_size, input_size), jnp.float32, -lim1, lim1)
    b1 = jax.random.uniform(k2, (hidden_size,), jnp.float32, -lim1, lim1)
    gamma = jnp.ones((hidden_size,), jnp.float32)   # BatchNorm1d weight init
    beta = jnp.zeros((hidden_size,), jnp.float32)   # BatchNorm1d bias init
    w2 = jax.random.uniform(k3, (1, hidden_size), jnp.float32, -lim2, lim2)
    b2 = jax.random.uniform(k4, (1,), jnp.float32, -lim2, lim2)
    return (w1, b1, gamma, beta, w2, b2)


if __name__ == "__main__":
    BATCH = 8
    INPUT_SIZE = 16
    HIDDEN_SIZE = 32
    DROPOUT_P = 0.5

    key = jax.random.PRNGKey(0)
    k_x, k_p, k_drop = jax.random.split(key, 3)

    x = jax.random.normal(k_x, (BATCH, INPUT_SIZE), dtype=jnp.float32)
    params = init_params(k_p, INPUT_SIZE, HIDDEN_SIZE)

    out = rna_classifier_forward(x, params, k_drop, dropout_p=DROPOUT_P)
    out = jax.block_until_ready(out)

    assert out.shape == (BATCH, 1)
    assert bool(jnp.all(jnp.isfinite(out)))
    assert bool(jnp.all((out >= 0.0) & (out <= 1.0)))
    print("KERNEL_OK")
</pallas_src>

<mosaic_0001>
module attributes {stable_mosaic.version = 11 : i64} {
  func.func @_rna_classifier_kernel(%arg0: memref<16x8xf32, #tpu.memory_space<vmem>>, %arg1: memref<32x16xf32, #tpu.memory_space<vmem>>, %arg2: memref<32x1xf32, #tpu.memory_space<vmem>>, %arg3: memref<32x1xf32, #tpu.memory_space<vmem>>, %arg4: memref<32x1xf32, #tpu.memory_space<vmem>>, %arg5: memref<32x1xf32, #tpu.memory_space<vmem>>, %arg6: memref<1x1xf32, #tpu.memory_space<vmem>>, %arg7: memref<32x8xi32, #tpu.memory_space<vmem>>, %arg8: memref<1x8xf32, #tpu.memory_space<vmem>>) attributes {dimension_semantics = [], scalar_prefetch = 0 : i64, scratch_operands = 0 : i64, tpu.core_type = #tpu.core_type<tc>} {
    %c0 = arith.constant 0 : index
    %c0_0 = arith.constant 0 : index
    %0 = vector.load %arg0[%c0, %c0_0] : memref<16x8xf32, #tpu.memory_space<vmem>>, vector<16x8xf32>
    %c0_1 = arith.constant 0 : index
    %c0_2 = arith.constant 0 : index
    %1 = vector.load %arg1[%c0_1, %c0_2] : memref<32x16xf32, #tpu.memory_space<vmem>>, vector<32x16xf32>
    %cst = arith.constant dense<0.000000e+00> : vector<32x8xf32>
    %2 = tpu.matmul %1, %0, %cst {dimension_numbers = #tpu.dot_dimension_numbers<[1], [0], [0], [1], [0, 0, 1, 1], [], []>} : vector<32x16xf32>, vector<16x8xf32>, vector<32x8xf32> -> vector<32x8xf32>
    %c0_3 = arith.constant 0 : index
    %c0_4 = arith.constant 0 : index
    %3 = vector.load %arg2[%c0_3, %c0_4] : memref<32x1xf32, #tpu.memory_space<vmem>>, vector<32x1xf32>
    %4 = vector.broadcast %3 : vector<32x1xf32> to vector<32x8xf32>
    %5 = arith.addf %2, %4 : vector<32x8xf32>
    %cst_5 = arith.constant dense<0.000000e+00> : vector<32xf32>
    %6 = vector.multi_reduction <add>, %5, %cst_5 [1] : vector<32x8xf32> to vector<32xf32>
    %7 = vector.shape_cast %6 : vector<32xf32> to vector<32x1xf32>
    %cst_6 = arith.constant 8.000000e+00 : f32
    %8 = vector.broadcast %cst_6 : f32 to vector<32x1xf32>
    %9 = arith.divf %7, %8 : vector<32x1xf32>
    %10 = vector.broadcast %9 : vector<32x1xf32> to vector<32x8xf32>
    %11 = arith.subf %5, %10 : vector<32x8xf32>
    %12 = arith.mulf %11, %11 : vector<32x8xf32>
    %cst_7 = arith.constant dense<0.000000e+00> : vector<32xf32>
    %13 = vector.multi_reduction <add>, %12, %cst_7 [1] : vector<32x8xf32> to vector<32xf32>
    %14 = vector.shape_cast %13 : vector<32xf32> to vector<32x1xf32>
    %cst_8 = arith.constant 8.000000e+00 : f32
    %15 = vector.broadcast %cst_8 : f32 to vector<32x1xf32>
    %16 = arith.divf %14, %15 : vector<32x1xf32>
    %c0_9 = arith.constant 0 : index
    %c0_10 = arith.constant 0 : index
    %17 = vector.load %arg3[%c0_9, %c0_10] : memref<32x1xf32, #tpu.memory_space<vmem>>, vector<32x1xf32>
    %cst_11 = arith.constant 9.99999974E-6 : f32
    %18 = vector.broadcast %cst_11 : f32 to vector<32x1xf32>
    %19 = arith.addf %16, %18 : vector<32x1xf32>
    %20 = math.rsqrt %19 : vector<32x1xf32>
    %21 = arith.mulf %17, %20 : vector<32x1xf32>
    %22 = vector.broadcast %21 : vector<32x1xf32> to vector<32x8xf32>
    %23 = arith.mulf %11, %22 : vector<32x8xf32>
    %c0_12 = arith.constant 0 : index
    %c0_13 = arith.constant 0 : index
    %24 = vector.load %arg4[%c0_12, %c0_13] : memref<32x1xf32, #tpu.memory_space<vmem>>, vector<32x1xf32>
    %25 = vector.broadcast %24 : vector<32x1xf32> to vector<32x8xf32>
    %26 = arith.addf %23, %25 : vector<32x8xf32>
    %cst_14 = arith.constant 0.000000e+00 : f32
    %27 = vector.broadcast %cst_14 : f32 to vector<32x8xf32>
    %28 = arith.maximumf %26, %27 : vector<32x8xf32>
    %c0_15 = arith.constant 0 : index
    %c0_16 = arith.constant 0 : index
    %29 = vector.load %arg7[%c0_15, %c0_16] : memref<32x8xi32, #tpu.memory_space<vmem>>, vector<32x8xi32>
    %c0_i32 = arith.constant 0 : i32
    %30 = vector.broadcast %c0_i32 : i32 to vector<32x8xi32>
    %31 = arith.cmpi sge, %29, %30 : vector<32x8xi32>
    %cst_17 = arith.constant 0.000000e+00 : f32
    %32 = vector.broadcast %cst_17 : f32 to vector<32x8xf32>
    %33 = arith.select %31, %28, %32 : vector<32x8xi1>, vector<32x8xf32>
    %c0_18 = arith.constant 0 : index
    %c0_19 = arith.constant 0 : index
    %34 = vector.load %arg5[%c0_18, %c0_19] : memref<32x1xf32, #tpu.memory_space<vmem>>, vector<32x1xf32>
    %35 = vector.broadcast %34 : vector<32x1xf32> to vector<32x8xf32>
    %36 = arith.mulf %33, %35 : vector<32x8xf32>
    %cst_20 = arith.constant dense<0.000000e+00> : vector<8xf32>
    %37 = vector.multi_reduction <add>, %36, %cst_20 [0] : vector<32x8xf32> to vector<8xf32>
    %38 = vector.shape_cast %37 : vector<8xf32> to vector<1x8xf32>
    %c0_21 = arith.constant 0 : index
    %c0_22 = arith.constant 0 : index
    %39 = vector.load %arg6[%c0_21, %c0_22] : memref<1x1xf32, #tpu.memory_space<vmem>>, vector<1x1xf32>
    %40 = vector.broadcast %39 : vector<1x1xf32> to vector<1x8xf32>
    %41 = arith.addf %38, %40 : vector<1x8xf32>
    %42 = arith.negf %41 : vector<1x8xf32>
    %43 = math.exp %42 : vector<1x8xf32>
    %cst_23 = arith.constant 1.000000e+00 : f32
    %44 = vector.broadcast %cst_23 : f32 to vector<1x8xf32>
    %45 = arith.addf %44, %43 : vector<1x8xf32>
    %46 = arith.divf %44, %45 : vector<1x8xf32>
    %c0_24 = arith.constant 0 : index
    %c0_25 = arith.constant 0 : index
    %47 = vector.load %arg8[%c0_24, %c0_25] : memref<1x8xf32, #tpu.memory_space<vmem>>, vector<1x8xf32>
    tpu.vector_store %arg8[%c0_24, %c0_25], %46 {strides = array<i32>} : memref<1x8xf32, #tpu.memory_space<vmem>>, vector<1x8xf32>,
    return
  }
}

</mosaic_0001>

<bundles_post_ra>
// kernel: tpu_custom_call.1
= control target key start
LH: loop header
LB: loop body
LE: loop exit
PB: predicated region body
PF: predicated region fallthrough
CT: control target
= control target key end

     0   :  { %s579_s0 = inlined_call_operand.vmem [shape: f32[16,8], index: 0, kind: input, shape index: {}]   ;;  %s580_s1 = inlined_call_operand.vmem [shape: f32[32,16], index: 1, kind: input, shape index: {}]   ;;  %s581_s2 = inlined_call_operand.vmem [shape: f32[32,1], index: 2, kind: input, shape index: {}]   ;;  %s582_s3 = inlined_call_operand.vmem [shape: f32[32,1], index: 3, kind: input, shape index: {}]   ;;  %s583_s4 = inlined_call_operand.vmem [shape: f32[32,1], index: 4, kind: input, shape index: {}]   ;;  %s584_s5 = inlined_call_operand.vmem [shape: f32[32,1], index: 5, kind: input, shape index: {}]   ;;  %s585_s6 = inlined_call_operand.<no memory space> [shape: f32[1,1], index: 6, kind: input, shape index: {}]   ;;  %s586_s7 = inlined_call_operand.vmem [shape: s32[32,8], index: 7, kind: input, shape index: {}]   ;;  %s587_s8 = inlined_call_operand.hbm [shape: f32[1,8], index: 8, kind: output, shape index: {}]  }
   0x1   :  { %v13_v0 = vstv %s585_s6 }
   0x2   :  { %14 = vst [vmem:[#allocation2] sm:$0x1] %v13_v0 }
   0x3   :  { %v33_v1 = vld [vmem:[%s579_s0 + $0x8] sm:$0xff]  ;;  %v32_v2 = vld [vmem:[%s579_s0] sm:$0xff]  ;;  %vm62_vm0 = vcmask 130048   ;;  %v36_v5 = vld [vmem:[%s580_s1 + $0x10] sm:$0xff] }
   0x4   :  { %89 = vmatpush.msra.mxu0 %v33_v1  ;;  %363 = vmatpush.msra.mxu1 %v33_v1  ;;  %v34_v3 = vld [vmem:[%s580_s1] sm:$0xff]  ;;  %v35_v4 = vld [vmem:[%s580_s1 + $0x8] sm:$0xff]  ;;  %v37_v6 = vld [vmem:[%s580_s1 + $0x18] sm:$0xff] }
   0x5   :  { %364 = vmatpush.msra.mxu2 %v33_v1  ;;  %365 = vmatpush.msra.mxu3 %v33_v1 }
   0x6   :  { %90 = vmatpush.msra.mxu0 %v32_v2  ;;  %366 = vmatpush.msra.mxu1 %v32_v2 }
   0x7   :  { %15 = vsyncpa [#allocation4], 0  ;;  %367 = vmatpush.msra.mxu2 %v32_v2  ;;  %368 = vmatpush.msra.mxu3 %v32_v2  ;;  %v38_v7 = vld [vmem:[%s581_s2] sm:$0xff]  ;;  %v40_v8 = vld [vmem:[%s581_s2 + $0x10] sm:$0xff]  ;;  %v415_v9 = vmov 0   ;;  %vm104_vm1 = vcmask 64512  }
   0x8   :  { %358 = vmatmul.msk.f32.vlgmr.msra.gmra.mxu0 %vm62_vm0, %v34_v3  ;;  %359 = vmatmul.msk.f32.vlgmr.msra.gmra.mxu1 %vm62_vm0, %v35_v4  ;;  %v39_v10 = vld [vmem:[%s581_s2 + $0x8] sm:$0xff]  ;;  %v41_v11 = vld [vmem:[%s581_s2 + $0x18] sm:$0xff]  ;;  %v230_v29 = vld [vmem:[%s583_s4 + $0x10] sm:$0xff]  ;;  %v416_v30 = vmov 8.0   ;;  %s349_s29 = sshll.u32 %s587_s8, 4  ;;  %s350_s29 = int_to_ptr.hbm [resolvable:$true] %s349_s29 }
   0x9   :  { %360 = vmatmul.msk.f32.vlgmr.msra.gmra.mxu2 %vm62_vm0, %v36_v5  ;;  %361 = vmatmul.msk.f32.vlgmr.msra.gmra.mxu3 %vm62_vm0, %v37_v6  ;;  %v229_v28 = vld [vmem:[%s583_s4 + $0x8] sm:$0xff]  ;;  %375 = vrcp.f32 %v416_v30  ;;  %v228_v57 = vld [vmem:[%s583_s4] sm:$0xff] }
   0xa   :  { %372 = vset.pattern.permute.xlu0 %v415_v9  ;;  %373 = vset.pattern.permute.xlu1 %v415_v9 }
   0xb   :  { %44 = vperm.xlu0 %372, %v38_v7   ;;  %54 = vperm.xlu1 %373, %v40_v8  }
   0xc   :  { %374 = vset.pattern.permute.xlu2 %v415_v9 }
   0xf   :  { %v376_v31 = vpop.eup %375 }
  0x10   :  { %v118_v32 = vmul.f32 8.0, %v376_v31  ;;  %vm122_vm2 = vweird.f32 %v376_v31 }
  0x12   :  { %v119_v33 = vsub.f32 1.0, %v118_v32  ;;  %v154_v32 = vld [vmem:[%s582_s3 + $0x10] sm:$0xff] }
  0x13   :  { %49 = vperm.xlu0 %372, %v39_v10   ;;  %59 = vperm.xlu1 %373, %v41_v11   ;;  %v152_v10 = vld [vmem:[%s582_s3] sm:$0xff] }
  0x14   :  { %v120_v34 = vmul.f32 %v376_v31, %v119_v33 }
  0x16   :  { %v121_v35 = vadd.f32 %v376_v31, %v120_v34 }
  0x18   :  { %v123_v36 = vsel %vm122_vm2, %v376_v31, %v121_v35  ;;  %v231_v35 = vld [vmem:[%s583_s4 + $0x18] sm:$0xff] }
  0x7d   :  { %v45_v12 = vpop.permute.xlu0 %44  ;;  %v55_v13 = vpop.permute.xlu1 %54 }
  0x85   :  { %v92_v14 = vpop.f32.mrf.mxu0  ;;  %v50_v17 = vpop.permute.xlu0 %49 }
  0x86   :  { %v93_v15 = vadd.f32 %v92_v14, %v45_v12  ;;  %v95_v18 = vpop.f32.mrf.mxu1  ;;  %v60_v19 = vpop.permute.xlu1 %59 }
  0x87   :  { %v96_v20 = vadd.f32 %v95_v18, %v50_v17 }
  0x88   :  { %v105_v16 = vsel %vm104_vm1, %v93_v15, 0.0 }
  0x89   :  { %106 = vadd.xlane.f32.xlu2 %v105_v16  ;;  %v108_v27 = vsel %vm104_vm1, %v96_v20, 0.0 }
  0x8c   :  { %v98_v21 = vpop.f32.mrf.mxu2  ;;  %v101_v22 = vpop.f32.mrf.mxu3 }
  0x8d   :  { %v99_v23 = vadd.f32 %v98_v21, %v55_v13  ;;  %v102_v24 = vadd.f32 %v101_v22, %v60_v19  ;;  %v153_v22 = vld [vmem:[%s582_s3 + $0x8] sm:$0xff] }
  0x8f   :  { %v114_v25 = vsel %vm104_vm1, %v102_v24, 0.0  ;;  %v111_v26 = vsel %vm104_vm1, %v99_v23, 0.0 }
  0x90   :  { %115 = vadd.xlane.f32.xlu1 %v114_v25  ;;  %112 = vadd.xlane.f32.xlu0 %v111_v26  ;;  %v272_v25 = vld [vmem:[%s584_s5] sm:$0xff] }
  0x91   :  { %109 = vadd.xlane.f32.xlu2 %v108_v27 }
  0xa4   :  { %239 = vperm.xlu0 %372, %v229_v28  }
  0xa9   :  { %244 = vperm.xlu1 %373, %v230_v29  }
  0xfc   :  { %v107_v37 = vpop.xlane.xlu2 %106 }
  0xfd   :  { %v124_v38 = vmul.f32 %v123_v36, %v107_v37 }
  0xff   :  { %v506_v39 = vsub.f32 %v93_v15, %v124_v38 }
 0x101   :  { %v132_v40 = vmul.f32 %v506_v39, %v506_v39 }
 0x103   :  { %v136_v41 = vsel %vm104_vm1, %v132_v40, 0.0  ;;  %v113_v42 = vpop.xlane.xlu0 %112  ;;  %v116_v50 = vpop.xlane.xlu1 %115 }
 0x104   :  { %137 = vadd.xlane.f32.xlu2 %v136_v41  ;;  %v110_v43 = vpop.xlane.xlu2 %109  ;;  %v126_v45 = vmul.f32 %v123_v36, %v113_v42  ;;  %v127_v51 = vmul.f32 %v123_v36, %v116_v50  ;;  %v155_v41 = vld [vmem:[%s582_s3 + $0x18] sm:$0xff] }
 0x105   :  { %v125_v44 = vmul.f32 %v123_v36, %v110_v43  ;;  %v274_v43 = vld [vmem:[%s584_s5 + $0x10] sm:$0xff]  ;;  %v275_v50 = vld [vmem:[%s584_s5 + $0x18] sm:$0xff] }
 0x106   :  { %v515_v48 = vsub.f32 %v99_v23, %v126_v45  ;;  %v520_v53 = vsub.f32 %v102_v24, %v127_v51 }
 0x107   :  { %v511_v46 = vsub.f32 %v96_v20, %v125_v44  ;;  %v273_v44 = vld [vmem:[%s584_s5 + $0x8] sm:$0xff] }
 0x108   :  { %v134_v52 = vmul.f32 %v515_v48, %v515_v48  ;;  %v135_v55 = vmul.f32 %v520_v53, %v520_v53 }
 0x109   :  { %v133_v47 = vmul.f32 %v511_v46, %v511_v46 }
 0x10a   :  { %v142_v54 = vsel %vm104_vm1, %v134_v52, 0.0  ;;  %v145_v56 = vsel %vm104_vm1, %v135_v55, 0.0 }
 0x10b   :  { %v139_v49 = vsel %vm104_vm1, %v133_v47, 0.0 }
 0x10c   :  { %140 = vadd.xlane.f32.xlu2 %v139_v49  ;;  %v313_v49 = vld [vmem:[#allocation2] sm:$0x1] }
 0x114   :  { %143 = vadd.xlane.f32.xlu2 %v142_v54 }
 0x116   :  { %v240_v54 = vpop.permute.xlu0 %239 }
 0x11c   :  { %146 = vadd.xlane.f32.xlu2 %v145_v56  ;;  %v245_v56 = vpop.permute.xlu1 %244 }
 0x134   :  { %234 = vperm.xlu2 %374, %v228_v57  }
 0x177   :  { %v138_v58 = vpop.xlane.xlu2 %137 }
 0x178   :  { %v148_v59 = vmul.f32 %v138_v58, %v123_v36 }
 0x17a   :  { %v156_v60 = vadd.f32 1e-05, %v148_v59 }
 0x17c   :  { %377 = vrsqrt.f32 %v156_v60  ;;  %vm166_vm4 = vweird.f32 %v156_v60 }
 0x17f   :  { %v141_v61 = vpop.xlane.xlu2 %140 }
 0x180   :  { %v149_v62 = vmul.f32 %v141_v61, %v123_v36 }
 0x182   :  { %v378_v63 = vpop.eup %377  ;;  %v157_v0 = vadd.f32 1e-05, %v149_v62  ;;  %v260_v62 = vld [vmem:[%s586_s7] sm:$0xff] }
 0x183   :  { %v161_v1 = vmul.f32 %v378_v63, %v156_v60  ;;  %vm167_vm3 = vweird.f32 %v378_v63  ;;  %vm264_vm15 = vcmp.ge.s32.totalorder %v260_v62, 0 }
 0x184   :  { %379 = vrsqrt.f32 %v157_v0  ;;  %vm168_vm5 = vmor %vm166_vm4, %vm167_vm3  ;;  %vm176_vm7 = vweird.f32 %v157_v0 }
 0x185   :  { %v162_v2 = vmul.f32 %v378_v63, %v161_v1 }
 0x187   :  { %v163_v3 = vmul.f32 0.5, %v162_v2  ;;  %v144_v4 = vpop.xlane.xlu2 %143 }
 0x188   :  { %v150_v5 = vmul.f32 %v144_v4, %v123_v36 }
 0x189   :  { %v164_v6 = vsub.f32 1.5, %v163_v3 }
 0x18a   :  { %v380_v7 = vpop.eup %379  ;;  %v158_v8 = vadd.f32 1e-05, %v150_v5 }
 0x18b   :  { %v171_v9 = vmul.f32 %v380_v7, %v157_v0  ;;  %v165_v11 = vmul.f32 %v378_v63, %v164_v6  ;;  %vm177_vm6 = vweird.f32 %v380_v7 }
 0x18c   :  { %381 = vrsqrt.f32 %v158_v8  ;;  %vm178_vm8 = vmor %vm176_vm7, %vm177_vm6  ;;  %vm186_vm10 = vweird.f32 %v158_v8  ;;  %vm340_vm6 = vcmask 57344  }
 0x18d   :  { %v172_v12 = vmul.f32 %v380_v7, %v171_v9  ;;  %v169_v13 = vsel %vm168_vm5, %v378_v63, %v165_v11 }
 0x18e   :  { %v200_v14 = vmul.f32 %v169_v13, %v152_v10 }
 0x18f   :  { %v173_v15 = vmul.f32 0.5, %v172_v12  ;;  %v147_v16 = vpop.xlane.xlu2 %146 }
 0x190   :  { %v151_v17 = vmul.f32 %v147_v16, %v123_v36  ;;  %206 = vperm.xlu2 %374, %v200_v14  }
 0x191   :  { %v174_v18 = vsub.f32 1.5, %v173_v15 }
 0x192   :  { %v382_v19 = vpop.eup %381  ;;  %v159_v20 = vadd.f32 1e-05, %v151_v17 }
 0x193   :  { %v181_v21 = vmul.f32 %v382_v19, %v158_v8  ;;  %v175_v23 = vmul.f32 %v380_v7, %v174_v18  ;;  %vm187_vm9 = vweird.f32 %v382_v19 }
 0x194   :  { %383 = vrsqrt.f32 %v159_v20  ;;  %vm188_vm11 = vmor %vm186_vm10, %vm187_vm9  ;;  %vm196_vm13 = vweird.f32 %v159_v20 }
 0x195   :  { %v182_v24 = vmul.f32 %v382_v19, %v181_v21  ;;  %v179_v26 = vsel %vm178_vm8, %v380_v7, %v175_v23 }
 0x196   :  { %v201_v27 = vmul.f32 %v179_v26, %v153_v22 }
 0x197   :  { %v183_v28 = vmul.f32 0.5, %v182_v24  ;;  %v235_v51 = vpop.permute.xlu2 %234 }
 0x198   :  { %278 = vperm.xlu2 %374, %v272_v25   ;;  %211 = vperm.xlu0 %372, %v201_v27  }
 0x199   :  { %v184_v29 = vsub.f32 1.5, %v183_v28 }
 0x19a   :  { %v384_v30 = vpop.eup %383 }
 0x19b   :  { %v191_v31 = vmul.f32 %v384_v30, %v159_v20  ;;  %v185_v33 = vmul.f32 %v382_v19, %v184_v29  ;;  %vm197_vm12 = vweird.f32 %v384_v30 }
 0x19c   :  { %vm198_vm14 = vmor %vm196_vm13, %vm197_vm12 }
 0x19d   :  { %v192_v34 = vmul.f32 %v384_v30, %v191_v31  ;;  %v189_v36 = vsel %vm188_vm11, %v382_v19, %v185_v33 }
 0x19e   :  { %v202_v37 = vmul.f32 %v189_v36, %v154_v32 }
 0x19f   :  { %v193_v38 = vmul.f32 0.5, %v192_v34 }
 0x1a0   :  { %249 = vperm.xlu0 %372, %v231_v35   ;;  %216 = vperm.xlu1 %373, %v202_v37  }
 0x1a1   :  { %v194_v40 = vsub.f32 1.5, %v193_v38 }
 0x1a3   :  { %v195_v42 = vmul.f32 %v384_v30, %v194_v40 }
 0x1a5   :  { %v199_v45 = vsel %vm198_vm14, %v384_v30, %v195_v42 }
 0x1a6   :  { %v203_v47 = vmul.f32 %v199_v45, %v155_v41 }
 0x1a8   :  { %288 = vperm.xlu0 %372, %v274_v43   ;;  %283 = vperm.xlu1 %373, %v273_v44  }
 0x1a9   :  { %221 = vperm.xlu2 %374, %v203_v47  }
 0x1b0   :  { %316 = vperm.xlu1 %373, %v313_v49  }
 0x1b1   :  { %293 = vperm.xlu2 %374, %v275_v50  }
 0x1ea   :  { %v207_v52 = vpop.permute.xlu2 %206 }
 0x1eb   :  { %v224_v57 = vmul.f32 %v207_v52, %v506_v39  ;;  %v262_v39 = vld [vmem:[%s586_s7 + $0x10] sm:$0xff] }
 0x1ec   :  { %vm266_vm0 = vcmp.ge.s32.totalorder %v262_v39, 0 }
 0x1ed   :  { %v252_v59 = vadd.f32 %v235_v51, %v224_v57 }
 0x1ef   :  { %v256_v0 = vmax.f32 %v252_v59, 0.0 }
 0x1f1   :  { %v268_v7 = vsel %vm264_vm15, %v256_v0, 0.0 }
 0x1f2   :  { %v279_v55 = vpop.permute.xlu2 %278 }
 0x203   :  { %v222_v60 = vpop.permute.xlu2 %221 }
 0x204   :  { %v227_v63 = vmul.f32 %v222_v60, %v520_v53  ;;  %v261_v53 = vld [vmem:[%s586_s7 + $0x8] sm:$0xff] }
 0x205   :  { %vm265_vm3 = vcmp.ge.s32.totalorder %v261_v53, 0 }
 0x20a   :  { %v212_v58 = vpop.permute.xlu0 %211 }
 0x20b   :  { %v225_v61 = vmul.f32 %v212_v58, %v511_v46  ;;  %v263_v46 = vld [vmem:[%s586_s7 + $0x18] sm:$0xff]  ;;  %v294_v18 = vpop.permute.xlu2 %293  ;;  %s417_s7 = smov [#allocation3]  }
 0x20c   :  { %vm267_vm2 = vcmp.ge.s32.totalorder %v263_v46, 0  ;;  %s347_s26 = sshll.u32 %s417_s7, 4  ;;  %s348_s26 = int_to_ptr.vmem [resolvable:$true] %s347_s26 }
 0x20d   :  { %v253_v1 = vadd.f32 %v240_v54, %v225_v61 }
 0x20f   :  { %v257_v8 = vmax.f32 %v253_v1, 0.0 }
 0x211   :  { %v269_v14 = vsel %vm265_vm3, %v257_v8, 0.0 }
 0x212   :  { %v250_v2 = vpop.permute.xlu0 %249  ;;  %v217_v3 = vpop.permute.xlu1 %216 }
 0x213   :  { %v255_v4 = vadd.f32 %v250_v2, %v227_v63  ;;  %v226_v5 = vmul.f32 %v217_v3, %v515_v48  ;;  %v296_v48 = vmul.f32 %v279_v55, %v268_v7 }
 0x215   :  { %v254_v6 = vadd.f32 %v245_v56, %v226_v5  ;;  %v259_v9 = vmax.f32 %v255_v4, 0.0  ;;  %v300_v19 = vsel %vm104_vm1, %v296_v48, 0.0 }
 0x217   :  { %v258_v10 = vmax.f32 %v254_v6, 0.0  ;;  %v271_v12 = vsel %vm267_vm2, %v259_v9, 0.0 }
 0x218   :  { %v299_v20 = vmul.f32 %v294_v18, %v271_v12 }
 0x219   :  { %v270_v11 = vsel %vm266_vm0, %v258_v10, 0.0 }
 0x21a   :  { %v289_v13 = vpop.permute.xlu0 %288  ;;  %v284_v15 = vpop.permute.xlu1 %283  ;;  %v305_v25 = vsel %vm104_vm1, %v299_v20, 0.0 }
 0x21b   :  { %v298_v16 = vmul.f32 %v289_v13, %v270_v11  ;;  %v297_v17 = vmul.f32 %v284_v15, %v269_v14 }
 0x21d   :  { %v301_v21 = vsel %vm104_vm1, %v297_v17, 0.0  ;;  %v303_v23 = vsel %vm104_vm1, %v298_v16, 0.0 }
 0x21e   :  { %v302_v22 = vadd.f32 %v301_v21, %v300_v19 }
 0x220   :  { %v304_v24 = vadd.f32 %v303_v23, %v302_v22 }
 0x222   :  { %v306_v26 = vadd.f32 %v305_v25, %v304_v24  ;;  %v317_v31 = vpop.permute.xlu1 %316 }
 0x223   :  { %v319_v34 = vperm.slane %v317_v31, 0 }
 0x224   :  { %v307_v27 = vrot.slane %v306_v26, 4 }
 0x226   :  { %v308_v28 = vadd.f32 %v307_v27, %v306_v26 }
 0x228   :  { %v309_v29 = vrot.slane %v308_v28, 2 }
 0x22a   :  { %v310_v30 = vadd.f32 %v309_v29, %v308_v28 }
 0x22c   :  { %v311_v32 = vrot.slane %v310_v30, 1 }
 0x22e   :  { %v312_v33 = vadd.f32 %v311_v32, %v310_v30 }
 0x230   :  { %v320_v35 = vadd.f32 %v319_v34, %v312_v33 }
 0x232   :  { %v362_v36 = vmul.f32 -1.442695, %v320_v35 }
 0x234   :  { %385 = vpow2.f32 %v362_v36 }
 0x23a   :  { %v386_v37 = vpop.eup %385 }
 0x23b   :  { %v324_v38 = vadd.f32 1.0, %v386_v37 }
 0x23d   :  { %387 = vrcp.f32 %v324_v38  ;;  %v336_v43 = vand.u32 2147483648, %v324_v38  ;;  %v334_v45 = vand.u32 2147483647, %v324_v38  ;;  %vm330_vm4 = vweird.f32 %v324_v38 }
 0x23f   :  { %v337_v49 = vor.u32 1.1754944e-38, %v336_v43  ;;  %vm335_vm7 = vcmp.eq.f32.partialorder %v334_v45, 8.507059e+37 }
 0x243   :  { %v388_v40 = vpop.eup %387 }
 0x244   :  { %v326_v41 = vmul.f32 %v388_v40, %v324_v38  ;;  %vm331_vm1 = vweird.f32 %v388_v40 }
 0x245   :  { %vm332_vm5 = vmor %vm330_vm4, %vm331_vm1 }
 0x246   :  { %v327_v42 = vsub.f32 1.0, %v326_v41 }
 0x248   :  { %v328_v44 = vmul.f32 %v388_v40, %v327_v42 }
 0x24a   :  { %v329_v47 = vadd.f32 %v388_v40, %v328_v44 }
 0x24c   :  { %v333_v50 = vsel %vm332_vm5, %v388_v40, %v329_v47 }
 0x24d   :  { %v338_v51 = vsel %vm335_vm7, %v337_v49, %v333_v50 }
 0x24e   :  { %341 = vst.msk [vmem:[#allocation3] sm:$0x1] %vm340_vm6, %v338_v51 }
 0x24f   :  { %352 = dma.vmem_to_hbm [thread:$0]  %s348_s26, 16, %s350_s29, [#allocation4]  }
 0x250   :  { %413 = dma.done.wait [#allocation4], 16  }
 0x251   :  { %414 = vsyncadd [#allocation4], 4294967280 }
 0x252   :  { %357 = vsyncpa [#allocation4], 1 }

</bundles_post_ra>
